<compile_context>
chip_gen: v5e
topology: v5e:2x2
jax: 0.10.0
libtpu: 0.0.40
codegen_flags: <defaults>
</compile_context>

<pallas_src>
import functools
import math

import jax
import jax.numpy as jnp
import numpy as np
from jax.experimental import pallas as pl
from jax.experimental.pallas import tpu as pltpu


def _round_up(x, m):
    return (x + m - 1) // m * m


def _cparams():
    # Explicit scoped-VMEM budget (well under v7x's 64 MiB physical VMEM).
    return pltpu.CompilerParams(vmem_limit_bytes=48 * 1024 * 1024)


# ---------------------------------------------------------------------------
# pltpu.roll direction probe (run once, eagerly) so lane shifts are
# convention-independent.
# ---------------------------------------------------------------------------
_ROLL_COEF = None


def _roll_coef():
    global _ROLL_COEF
    if _ROLL_COEF is None:
        def probe(x_ref, o_ref):
            o_ref[...] = pltpu.roll(x_ref[...], 1, 1)

        x = jnp.broadcast_to(jnp.arange(128, dtype=jnp.float32), (8, 128))
        y = pl.pallas_call(
            probe, out_shape=jax.ShapeDtypeStruct((8, 128), jnp.float32))(x)
        first = float(y[0, 0])
        if first == 127.0:      # jnp.roll convention: result[i] = x[i - shift]
            _ROLL_COEF = -1
        elif first == 1.0:      # opposite convention: result[i] = x[i + shift]
            _ROLL_COEF = 1
        else:
            raise RuntimeError(f"unexpected pltpu.roll behaviour: {first}")
    return _ROLL_COEF


# ---------------------------------------------------------------------------
# In-kernel helpers
# ---------------------------------------------------------------------------
def _lane_shift(a, off, coef):
    """result[:, i] = a[:, (i + off) mod L] (lane axis)."""
    if off == 0:
        return a
    return pltpu.roll(a, (coef * off) % a.shape[-1], 1)


def _write_taps(taps_ref, a, d_seg, c0, coef):
    """Write the 3 kw-shifted copies of `a` into the tap cache.

    taps_ref: (3*d_seg, NL); segment kw occupies rows [kw*d_seg, (kw+1)*d_seg);
    `a` (rows, NL) lands at channel offset c0 of every segment.  Only the new
    channels are rolled (2 XLU rolls + 1 copy).
    """
    rows = a.shape[0]
    for kw in range(3):
        base = kw * d_seg + c0
        taps_ref[base:base + rows, :] = _lane_shift(a, kw - 1, coef)


def _conv3x3_from_taps(taps_ref, w_ref, w_base, b, Wp, coef, mask=None,
                       act="none"):
    """3x3 'same' conv = 3 accumulating MXU matmuls + 2 XLU output rolls.

    taps_ref: (3*d_seg, NL) kw-tap cache of the input (zero spatial border).
    w_ref[w_base + kh]: (Cout, 3*d_seg) slab, columns laid out as [kw, ci].
    Returns (Cout, NL); border/tail is re-zeroed iff `mask` is given.
    """
    taps = taps_ref[...]
    acc = None
    for kh in range(3):
        part = jnp.dot(w_ref[w_base + kh], taps,
                       preferred_element_type=jnp.float32)
        part = _lane_shift(part, (kh - 1) * Wp, coef)
        acc = part if acc is None else acc + part
    acc = acc + b
    if act == "relu":
        acc = jnp.maximum(acc, 0.0)
    elif act == "clamp":
        acc = jnp.clip(acc, 0.0, 1.0)
    if mask is not None:
        acc = acc * mask
    return acc


# ---------------------------------------------------------------------------
# Kernels
# ---------------------------------------------------------------------------
def _trunk_kernel(x_ref, mask_ref, wc3_ref, bc3_ref, wrb_ref, brb_ref,
                  wlff_ref, blff_ref, wgff1_ref, bgff1_ref,
                  o_ref, taps_ref, *, num_rdb, num_rb, C, G, D, Wp, coef):
    """head(conv1,conv2) + all RDBs + GFF(1x1 accumulated + 3x3) + residual."""
    mask = mask_ref[...]

    # One-time zero init so zero-padded weight columns always hit finite zeros.
    taps_ref[...] = jnp.zeros_like(taps_ref)

    # ---- head: conv1, conv2 ------------------------------------------------
    _write_taps(taps_ref, x_ref[...], D, 0, coef)
    out1 = _conv3x3_from_taps(taps_ref, wc3_ref, 0, bc3_ref[0:C, :], Wp, coef,
                              mask=mask)
    _write_taps(taps_ref, out1, D, 0, coef)
    feat = _conv3x3_from_taps(taps_ref, wc3_ref, 3, bc3_ref[C:2 * C, :], Wp,
                              coef, mask=mask)

    # ---- residual dense blocks + fused GFF-1x1 accumulation -----------------
    acc_gff = None
    for r in range(num_rdb):
        identity = feat
        _write_taps(taps_ref, feat, D, 0, coef)       # refresh first C channels
        for j in range(num_rb):
            li = r * num_rb + j
            y = _conv3x3_from_taps(taps_ref, wrb_ref, 3 * li,
                                   brb_ref[li * G:(li + 1) * G, :], Wp, coef,
                                   mask=mask, act="relu")
            _write_taps(taps_ref, y, D, C + j * G, coef)
        dense = taps_ref[D:2 * D, :]      # kw=1 segment IS the dense concat
        lff = jnp.dot(wlff_ref[r], dense, preferred_element_type=jnp.float32)
        feat = (lff + blff_ref[r * C:(r + 1) * C, :]) * mask + identity
        g = jnp.dot(wgff1_ref[r], feat, preferred_element_type=jnp.float32)
        acc_gff = g if acc_gff is None else acc_gff + g

    # ---- global feature fusion: 1x1 (already accumulated) + 3x3 -------------
    gff = (acc_gff + bgff1_ref[...]) * mask
    _write_taps(taps_ref, gff, D, 0, coef)
    f = _conv3x3_from_taps(taps_ref, wc3_ref, 6, bc3_ref[2 * C:3 * C, :], Wp,
                           coef, mask=mask)
    o_ref[...] = f + out1                              # fused global residual


def _conv_kernel(x_ref, w_ref, b_ref, o_ref, taps_ref, *, d_seg, Wp, act, coef):
    """Single 3x3 conv; output border/tail is discarded by the wrapper, so the
    interior-mask multiply is skipped."""
    _write_taps(taps_ref, x_ref[...], d_seg, 0, coef)
    o_ref[...] = _conv3x3_from_taps(taps_ref, w_ref, 0, b_ref[...], Wp, coef,
                                    mask=None, act=act)


# ---------------------------------------------------------------------------
# Wrapper-side helpers (layout plumbing, weight slabs)
# ---------------------------------------------------------------------------
def _w3slab(w, d_seg):
    """(3,3,Cin,Cout) HWIO -> (3, Cout, 3*d_seg) kh-major slab, cols [kw, ci]."""
    _, _, ci, _ = w.shape
    s = jnp.transpose(w, (0, 3, 1, 2))                 # (kh, Cout, kw, Cin)
    s = jnp.pad(s, ((0, 0), (0, 0), (0, 0), (0, d_seg - ci)))
    return s.reshape(3, s.shape[1], 3 * d_seg)


def _w1mat(w):
    """(1,1,Cin,Cout) -> (Cout, Cin)."""
    return jnp.transpose(w[0, 0], (1, 0))


def _interior_mask(N, H, W, lanes):
    Hp, Wp = H + 2, W + 2
    m = np.zeros((Hp, Wp), np.float32)
    m[1:H + 1, 1:W + 1] = 1.0
    m = np.pad(m.reshape(1, Hp * Wp), ((0, 0), (0, lanes - Hp * Wp)))
    return jnp.asarray(np.tile(m, (1, N)))


def _fold_nl(x_nchw, c_pad, lanes):
    """(N,C,H,W) -> (c_pad, N*lanes): zero border/channel pad, flatten the
    padded spatial map onto lanes, fold batch into the lane axis."""
    N, Cc, H, W = x_nchw.shape
    x = jnp.pad(x_nchw, ((0, 0), (0, c_pad - Cc), (1, 1), (1, 1)))
    x = x.reshape(N, c_pad, (H + 2) * (W + 2))
    x = jnp.pad(x, ((0, 0), (0, 0), (0, lanes - (H + 2) * (W + 2))))
    return jnp.transpose(x, (1, 0, 2)).reshape(c_pad, N * lanes)


def _unfold_nl(x_flat, N, Cc, H, W):
    """(rows, N*lanes) -> (N, Cc, H, W) interior pixels."""
    Hp, Wp = H + 2, W + 2
    lanes = x_flat.shape[1] // N
    x = x_flat.reshape(x_flat.shape[0], N, lanes)[:Cc, :, :Hp * Wp]
    x = jnp.transpose(x, (1, 0, 2)).reshape(N, Cc, Hp, Wp)
    return x[:, :, 1:H + 1, 1:W + 1]


def pixel_shuffle_nchw(x, r):
    N, Cc, H, W = x.shape
    Co = Cc // (r * r)
    x = x.reshape(N, Co, r, r, H, W)
    x = jnp.transpose(x, (0, 1, 4, 2, 5, 3))
    return x.reshape(N, Co, H * r, W * r)


# ---------------------------------------------------------------------------
# RDN forward (Pallas)
# ---------------------------------------------------------------------------
def rdn_forward_pallas(x_nchw, params):
    coef = _roll_coef()
    N, cin_img, H, W = x_nchw.shape
    C = params["conv2"][0].shape[3]
    G = params["trunk"][0]["rb"][0][0].shape[3]
    num_rb = len(params["trunk"][0]["rb"])
    num_rdb = len(params["trunk"])
    cout_img = params["conv3"][0].shape[3]

    assert C % 8 == 0 and G % 8 == 0, "channels / growth_channels must be x8"
    D = C + num_rb * G                        # dense-concat width
    cin_pad = _round_up(cin_img, 8)

    Wp = W + 2
    lanes = _round_up((H + 2) * Wp, 128)
    NL = N * lanes
    mask = _interior_mask(N, H, W, lanes)
    x_flat = _fold_nl(x_nchw, cin_pad, lanes)

    # ---- packed weight slabs (one operand / DMA descriptor per category) ---
    wc3 = jnp.concatenate([_w3slab(params["conv1"][0], D),
                           _w3slab(params["conv2"][0], D),
                           _w3slab(params["gff2"][0], D)], axis=0)
    bc3 = jnp.concatenate([params["conv1"][1], params["conv2"][1],
                           params["gff2"][1]]).reshape(-1, 1)
    wrb = jnp.concatenate(
        [_w3slab(w, D) for blk in params["trunk"] for (w, _) in blk["rb"]],
        axis=0)
    brb = jnp.concatenate(
        [b for blk in params["trunk"] for (_, b) in blk["rb"]]).reshape(-1, 1)
    wlff = jnp.stack([_w1mat(blk["lff"][0]) for blk in params["trunk"]])
    blff = jnp.concatenate(
        [blk["lff"][1] for blk in params["trunk"]]).reshape(-1, 1)
    w1full, b1 = params["gff1"]
    wgff1 = jnp.stack([_w1mat(w1full[:, :, r * C:(r + 1) * C, :])
                       for r in range(num_rdb)])
    bgff1 = b1.reshape(-1, 1)

    n_conv_c = 3                               # conv1, conv2, gff2
    n_conv_g = num_rdb * num_rb
    flops = (n_conv_c * 18 * C * D * NL + n_conv_g * 18 * G * D * NL
             + num_rdb * 2 * C * (D + C) * NL)
    bytes_accessed = 4 * int(sum(a.size for a in
                                 (x_flat, mask, wc3, bc3, wrb, brb,
                                  wlff, blff, wgff1, bgff1)) + C * NL)

    # ---- one fused pallas_call: head + all RDBs + GFF + global residual ----
    out_flat = pl.pallas_call(
        functools.partial(_trunk_kernel, num_rdb=num_rdb, num_rb=num_rb,
                          C=C, G=G, D=D, Wp=Wp, coef=coef),
        out_shape=jax.ShapeDtypeStruct((C, NL), jnp.float32),
        scratch_shapes=[pltpu.VMEM((3 * D, NL), jnp.float32)],
        compiler_params=_cparams(),
        cost_estimate=pl.CostEstimate(flops=flops, transcendentals=0,
                                      bytes_accessed=bytes_accessed),
    )(x_flat, mask, wc3, bc3, wrb, brb, wlff, blff, wgff1, bgff1)

    # ---- upsampling: conv (Pallas) -> PixelShuffle(2) (plain-JAX plumbing) --
    cur_H, cur_W, cur_lanes = H, W, lanes
    for (w, b) in params["upsampling"]:
        c4 = w.shape[3]
        y = pl.pallas_call(
            functools.partial(_conv_kernel, d_seg=C, Wp=cur_W + 2, act="none",
                              coef=coef),
            out_shape=jax.ShapeDtypeStruct((c4, N * cur_lanes), jnp.float32),
            scratch_shapes=[pltpu.VMEM((3 * C, N * cur_lanes), jnp.float32)],
            compiler_params=_cparams(),
        )(out_flat, _w3slab(w, C), b.reshape(-1, 1))
        y = pixel_shuffle_nchw(_unfold_nl(y, N, c4, cur_H, cur_W), 2)
        cur_H, cur_W = 2 * cur_H, 2 * cur_W
        cur_lanes = _round_up((cur_H + 2) * (cur_W + 2), 128)
        out_flat = _fold_nl(y, C, cur_lanes)

    # ---- final 3x3 conv + clamp (border/tail discarded, so no mask) ---------
    cout_pad = _round_up(cout_img, 8)
    w3 = jnp.pad(params["conv3"][0],
                 ((0, 0), (0, 0), (0, 0), (0, cout_pad - cout_img)))
    b3 = jnp.pad(params["conv3"][1], (0, cout_pad - cout_img)).reshape(-1, 1)
    y = pl.pallas_call(
        functools.partial(_conv_kernel, d_seg=C, Wp=cur_W + 2, act="clamp",
                          coef=coef),
        out_shape=jax.ShapeDtypeStruct((cout_pad, N * cur_lanes), jnp.float32),
        scratch_shapes=[pltpu.VMEM((3 * C, N * cur_lanes), jnp.float32)],
        compiler_params=_cparams(),
    )(out_flat, _w3slab(w3, C), b3)
    return _unfold_nl(y, N, cout_img, cur_H, cur_W)


# ---------------------------------------------------------------------------
# Pure-JAX reference (mirrors RDN._forward_impl) for the correctness check
# ---------------------------------------------------------------------------
def _ref_conv(x, w, b, act="none"):
    y = jax.lax.conv_general_dilated(
        x, w, window_strides=(1, 1), padding="SAME",
        dimension_numbers=("NCHW", "HWIO", "NCHW"))
    y = y + b.reshape(1, -1, 1, 1)
    if act == "relu":
        y = jnp.maximum(y, 0.0)
    elif act == "clamp":
        y = jnp.clip(y, 0.0, 1.0)
    return y


def rdn_forward_reference(x, params):
    out1 = _ref_conv(x, *params["conv1"])
    out = _ref_conv(out1, *params["conv2"])
    outs = []
    for rdb in params["trunk"]:
        identity = out
        h = out
        for (w, b) in rdb["rb"]:
            h = jnp.concatenate([h, _ref_conv(h, w, b, act="relu")], axis=1)
        out = _ref_conv(h, *rdb["lff"]) + identity
        outs.append(out)
    out = jnp.concatenate(outs, axis=1)
    out = _ref_conv(out, *params["gff1"])
    out = _ref_conv(out, *params["gff2"])
    out = out + out1
    for (w, b) in params["upsampling"]:
        out = pixel_shuffle_nchw(_ref_conv(out, w, b), 2)
    out = _ref_conv(out, *params["conv3"], act="clamp")
    return out


# ---------------------------------------------------------------------------
# Deterministic parameter init (shapes follow RDN.__init__), weights HWIO
# ---------------------------------------------------------------------------
def init_params(key, in_channels, out_channels, channels, num_rdb, num_rb,
                growth_channels, upscale_factor):
    keys = iter(jax.random.split(key, 256))

    def conv_p(K, cin, cout):
        kw, kb = jax.random.split(next(keys))
        w = jax.random.normal(kw, (K, K, cin, cout), jnp.float32)
        w = w * (1.0 / math.sqrt(K * K * cin))
        b = 0.01 * jax.random.normal(kb, (cout,), jnp.float32)
        return w, b

    params = {}
    params["conv1"] = conv_p(3, in_channels, channels)
    params["conv2"] = conv_p(3, channels, channels)

    trunk = []
    for _ in range(num_rdb):
        rb = [conv_p(3, channels + j * growth_channels, growth_channels)
              for j in range(num_rb)]
        lff = conv_p(1, channels + num_rb * growth_channels, channels)
        trunk.append({"rb": rb, "lff": lff})
    params["trunk"] = trunk

    params["gff1"] = conv_p(1, num_rdb * channels, channels)
    params["gff2"] = conv_p(3, channels, channels)

    ups = []
    if upscale_factor in (2, 4, 8):
        for _ in range(int(math.log(upscale_factor, 2))):
            ups.append(conv_p(3, channels, channels * 2 * 2))
    # TODO(synk): upscale_factor == 3 (single PixelShuffle(3)) path not wired up.
    params["upsampling"] = ups

    params["conv3"] = conv_p(3, channels, out_channels)
    return params


# ---------------------------------------------------------------------------
if __name__ == "__main__":
    in_channels, out_channels = 3, 3
    channels, growth_channels = 8, 8
    num_rdb, num_rb = 2, 2
    upscale_factor = 2
    N, H, W = 2, 16, 16

    key = jax.random.PRNGKey(0)
    kx, kp = jax.random.split(key)
    x = jax.random.uniform(kx, (N, in_channels, H, W), jnp.float32)
    params = init_params(kp, in_channels, out_channels, channels,
                         num_rdb, num_rb, growth_channels, upscale_factor)

    _roll_coef()                      # resolve roll convention eagerly (pre-jit)
    fwd = jax.jit(rdn_forward_pallas)
    y = jax.block_until_ready(fwd(x, params))

    y_ref = jax.block_until_ready(rdn_forward_reference(x, params))
    np.testing.assert_allclose(np.asarray(y), np.asarray(y_ref),
                               rtol=1e-4, atol=1e-4)
    assert y.shape == (N, out_channels, H * upscale_factor, W * upscale_factor)
    assert float(jnp.min(y)) >= 0.0 and float(jnp.max(y)) <= 1.0

    print("KERNEL_OK")
</pallas_src>

<mosaic_0001>
module attributes {stable_mosaic.version = 11 : i64} {
  func.func @probe(%arg0: memref<8x128xf32, #tpu.memory_space<vmem>>, %arg1: memref<8x128xf32, #tpu.memory_space<vmem>>) attributes {dimension_semantics = [], scalar_prefetch = 0 : i64, scratch_operands = 0 : i64, tpu.core_type = #tpu.core_type<tc>} {
    %c0 = arith.constant 0 : index
    %c0_0 = arith.constant 0 : index
    %0 = vector.load %arg0[%c0, %c0_0] : memref<8x128xf32, #tpu.memory_space<vmem>>, vector<8x128xf32>
    %c1_i32 = arith.constant 1 : i32
    %1 = tpu.dynamic_rotate %0 by %c1_i32 dim 1 : vector<8x128xf32>, i32 -> vector<8x128xf32>
    %c0_1 = arith.constant 0 : index
    %c0_2 = arith.constant 0 : index
    %2 = vector.load %arg1[%c0_1, %c0_2] : memref<8x128xf32, #tpu.memory_space<vmem>>, vector<8x128xf32>
    tpu.vector_store %arg1[%c0_1, %c0_2], %1 {strides = array<i32>} : memref<8x128xf32, #tpu.memory_space<vmem>>, vector<8x128xf32>,
    return
  }
}

</mosaic_0001>

<bundles_post_ra>
// kernel: tpu_custom_call.1
= control target key start
LH: loop header
LB: loop body
LE: loop exit
PB: predicated region body
PF: predicated region fallthrough
CT: control target
= control target key end

     0   :  { %6 = vsyncpa [#allocation3], 0  ;;  %s118_s0 = inlined_call_operand.hbm [shape: f32[8,128], index: 0, kind: input, shape index: {}]   ;;  %s119_s1 = inlined_call_operand.hbm [shape: f32[8,128], index: 1, kind: output, shape index: {}]  }
   0x1   :  { %7 = vsyncpa [#allocation4], 0  ;;  %s13_s8 = sshll.u32 %s118_s0, 4  ;;  %s99_s9 = smov [#allocation2]   ;;  %s14_s8 = int_to_ptr.hbm [resolvable:$true] %s13_s8 }
   0x2   :  { %s15_s10 = sshll.u32 %s99_s9, 4  ;;  %s16_s10 = int_to_ptr.vmem [resolvable:$true] %s15_s10 }
   0x3   :  { %18 = dma.hbm_to_vmem [thread:$0]  %s14_s8, 128, %s16_s10, [#allocation3]  }
   0x4   :  { %95 = dma.done.wait [#allocation3], 128  }
   0x5   :  { %96 = vsyncadd [#allocation3], 4294967168  ;;  %v23_v0 = vld [vmem:[#allocation2] sm:$0xff]  ;;  %s100_s11 = smov 1   ;;  %s101_s12 = smov [#allocation5]  }
   0x6   :  { %24 = vrot.lane.b32.xlu0 %v23_v0, %s100_s11  ;;  %s32_s13 = sshll.u32 %s101_s12, 4  ;;  %s34_s16 = sshll.u32 %s119_s1, 4  ;;  %s33_s13 = int_to_ptr.vmem [resolvable:$true] %s32_s13  ;;  %s35_s16 = int_to_ptr.hbm [resolvable:$true] %s34_s16 }
  0x78   :  { %v25_v1 = vpop.permute.xlu0 %24 }
  0x79   :  { %26 = vst [vmem:[#allocation5] sm:$0xff] %v25_v1 }
  0x7a   :  { %37 = dma.vmem_to_hbm [thread:$0]  %s33_s13, 128, %s35_s16, [#allocation4]  }
  0x7b   :  { %97 = dma.done.wait [#allocation4], 128  }
  0x7c   :  { %98 = vsyncadd [#allocation4], 4294967168 }
  0x7d   :  { %42 = vsyncpa [#allocation3], 1 }
  0x7e   :  { %43 = vsyncpa [#allocation4], 1 }

</bundles_post_ra>
